<compile_context>
chip_gen: v5e
topology: v5e:2x2
jax: 0.10.0
libtpu: 0.0.40
codegen_flags: <defaults>
</compile_context>

<pallas_src>
import jax
import jax.numpy as jnp
from jax.experimental import pallas as pl
from jax.experimental.pallas import tpu as pltpu

K_IN = 28 * 28      # 784
K_PAD = 896         # 7 * 128 (lane-dense contraction dim for layer 1)
H1 = 256
H2 = 128
N_CLASSES = 10
OUT_PAD = 128       # lane-dense padded output width


def ffa_net_kernel(x_ref, w1_ref, b1_ref, w2_ref, b2_ref, w3_ref, b3_ref, o_ref):
    # block1: Linear(896 -> 256) + ReLU   (bf16 operands, f32 accumulate)
    h1 = jnp.dot(x_ref[...], w1_ref[...], preferred_element_type=jnp.float32)
    h1 = jnp.maximum(h1 + b1_ref[...], 0.0)
    # block2: Linear(256 -> 128) + ReLU
    h2 = jnp.dot(h1.astype(jnp.bfloat16), w2_ref[...],
                 preferred_element_type=jnp.float32)
    h2 = jnp.maximum(h2 + b2_ref[...], 0.0)
    # final: Linear(128 -> 128-padded), real logits live in the first 10 lanes
    out = jnp.dot(h2.astype(jnp.bfloat16), w3_ref[...],
                  preferred_element_type=jnp.float32)
    o_ref[...] = (out + b3_ref[...]).astype(o_ref.dtype)


def _round_up(n, m):
    return ((n + m - 1) // m) * m


def ffa_net_forward(x_nchw, params, *, tile_b=512):
    """x_nchw: (B, 1, 28, 28) float32. Returns logits (B, 10) float32."""
    B = x_nchw.shape[0]
    x = x_nchw.reshape(B, -1).astype(jnp.float32)   # same as torch x.view(B, -1)
    w1, b1, w2, b2, w3, b3 = params

    # Batch tile: multiple of 16 (bf16 sublane packing), capped at tile_b.
    tile_b = min(tile_b, _round_up(B, 16))
    B_pad = _round_up(B, tile_b)

    # One-time wrapper-side padding / casting (outside the kernel).
    x_p = jnp.zeros((B_pad, K_PAD), jnp.bfloat16).at[:B, :K_IN].set(
        x.astype(jnp.bfloat16))
    w1_p = jnp.zeros((K_PAD, H1), jnp.bfloat16).at[:K_IN, :].set(
        w1.astype(jnp.bfloat16))
    w2_p = w2.astype(jnp.bfloat16)
    w3_p = jnp.zeros((H2, OUT_PAD), jnp.bfloat16).at[:, :N_CLASSES].set(
        w3.astype(jnp.bfloat16))
    b1_p = b1.astype(jnp.float32)
    b2_p = b2.astype(jnp.float32)
    b3_p = jnp.zeros((1, OUT_PAD), jnp.float32).at[:, :N_CLASSES].set(
        b3.astype(jnp.float32))

    grid = (B_pad // tile_b,)

    flops = 2 * B_pad * (K_PAD * H1 + H1 * H2 + H2 * OUT_PAD)
    bytes_accessed = (
        B_pad * K_PAD * 2                                    # x in (bf16)
        + B_pad * OUT_PAD * 4                                # logits out (f32)
        + (K_PAD * H1 + H1 * H2 + H2 * OUT_PAD) * 2          # weights (bf16)
        + (H1 + H2 + OUT_PAD) * 4                            # biases (f32)
    )

    out_p = pl.pallas_call(
        ffa_net_kernel,
        out_shape=jax.ShapeDtypeStruct((B_pad, OUT_PAD), jnp.float32),
        grid=grid,
        in_specs=[
            pl.BlockSpec((tile_b, K_PAD), lambda i: (i, 0)),   # x tile per step
            pl.BlockSpec((K_PAD, H1), lambda i: (0, 0)),       # weights resident
            pl.BlockSpec((1, H1), lambda i: (0, 0)),
            pl.BlockSpec((H1, H2), lambda i: (0, 0)),
            pl.BlockSpec((1, H2), lambda i: (0, 0)),
            pl.BlockSpec((H2, OUT_PAD), lambda i: (0, 0)),
            pl.BlockSpec((1, OUT_PAD), lambda i: (0, 0)),
        ],
        out_specs=pl.BlockSpec((tile_b, OUT_PAD), lambda i: (i, 0)),
        compiler_params=pltpu.CompilerParams(
            dimension_semantics=("parallel",),
        ),
        cost_estimate=pl.CostEstimate(
            flops=flops, transcendentals=0, bytes_accessed=bytes_accessed),
    )(x_p, w1_p, b1_p, w2_p, b2_p, w3_p, b3_p)

    # Drop batch padding and the 118 padded output lanes.
    return out_p[:B, :N_CLASSES]


def init_params(key):
    """Deterministic init mimicking nn.Linear's U(-1/sqrt(fan_in), 1/sqrt(fan_in)).
    Weights are (in_features, out_features)."""
    dims = [(K_IN, H1), (H1, H2), (H2, N_CLASSES)]
    params = []
    keys = jax.random.split(key, 2 * len(dims))
    for i, (fi, fo) in enumerate(dims):
        bound = 1.0 / jnp.sqrt(jnp.float32(fi))
        w = jax.random.uniform(keys[2 * i], (fi, fo), jnp.float32, -bound, bound)
        b = jax.random.uniform(keys[2 * i + 1], (1, fo), jnp.float32, -bound, bound)
        params += [w, b]
    return tuple(params)


def reference_forward_f32(x_nchw, params):
    """Pure f32 reference (exact PyTorch module semantics)."""
    w1, b1, w2, b2, w3, b3 = params
    x = x_nchw.reshape(x_nchw.shape[0], -1)
    h1 = jnp.maximum(x @ w1 + b1, 0.0)
    h2 = jnp.maximum(h1 @ w2 + b2, 0.0)
    return h2 @ w3 + b3


def reference_forward_bf16(x_nchw, params):
    """Reference with the same bf16-operand / f32-accumulate arithmetic as the kernel."""
    w1, b1, w2, b2, w3, b3 = params
    x = x_nchw.reshape(x_nchw.shape[0], -1).astype(jnp.bfloat16)
    h1 = jnp.dot(x, w1.astype(jnp.bfloat16), preferred_element_type=jnp.float32) + b1
    h1 = jnp.maximum(h1, 0.0)
    h2 = jnp.dot(h1.astype(jnp.bfloat16), w2.astype(jnp.bfloat16),
                 preferred_element_type=jnp.float32) + b2
    h2 = jnp.maximum(h2, 0.0)
    return jnp.dot(h2.astype(jnp.bfloat16), w3.astype(jnp.bfloat16),
                   preferred_element_type=jnp.float32) + b3


if __name__ == "__main__":
    key = jax.random.PRNGKey(0)
    k_x, k_p = jax.random.split(key)

    B = 2
    x = jax.random.normal(k_x, (B, 1, 28, 28), jnp.float32)  # MNIST-like NCHW input
    params = init_params(k_p)

    out = ffa_net_forward(x, params)
    out = jax.block_until_ready(out)
    assert out.shape == (B, N_CLASSES)

    # Tight check against an identical-arithmetic (bf16 operands, f32 acc) reference.
    ref_bf16 = reference_forward_bf16(x, params)
    assert jnp.allclose(out, ref_bf16, atol=1e-3, rtol=1e-3), "mismatch vs bf16 reference"

    # Loose check against the exact f32 module semantics (bf16 rounding only).
    ref_f32 = reference_forward_f32(x, params)
    assert jnp.allclose(out, ref_f32, atol=5e-2, rtol=5e-2), "mismatch vs f32 reference"

    print("KERNEL_OK")
</pallas_src>

<mosaic_0001>
module attributes {stable_mosaic.version = 11 : i64} {
  func.func @ffa_net_kernel(%arg0: i32, %arg1: memref<16x896xbf16, #tpu.memory_space<vmem>>, %arg2: memref<896x256xbf16, #tpu.memory_space<vmem>>, %arg3: memref<1x256xf32, #tpu.memory_space<vmem>>, %arg4: memref<256x128xbf16, #tpu.memory_space<vmem>>, %arg5: memref<1x128xf32, #tpu.memory_space<vmem>>, %arg6: memref<128x128xbf16, #tpu.memory_space<vmem>>, %arg7: memref<1x128xf32, #tpu.memory_space<vmem>>, %arg8: memref<16x128xf32, #tpu.memory_space<vmem>>) attributes {dimension_semantics = [#tpu.dimension_semantics<parallel>], iteration_bounds = array<i64: 1>, scalar_prefetch = 0 : i64, scratch_operands = 0 : i64, tpu.core_type = #tpu.core_type<tc>, window_params = [{transform_indices = @transform_0, window_bounds = array<i64: 16, 896>}, {pipeline_mode = #tpu.pipeline_mode<synchronous>, transform_indices = @transform_1, window_bounds = array<i64: 896, 256>}, {pipeline_mode = #tpu.pipeline_mode<synchronous>, transform_indices = @transform_2, window_bounds = array<i64: 1, 256>}, {pipeline_mode = #tpu.pipeline_mode<synchronous>, transform_indices = @transform_3, window_bounds = array<i64: 256, 128>}, {pipeline_mode = #tpu.pipeline_mode<synchronous>, transform_indices = @transform_4, window_bounds = array<i64: 1, 128>}, {pipeline_mode = #tpu.pipeline_mode<synchronous>, transform_indices = @transform_5, window_bounds = array<i64: 128, 128>}, {pipeline_mode = #tpu.pipeline_mode<synchronous>, transform_indices = @transform_6, window_bounds = array<i64: 1, 128>}, {transform_indices = @transform_7, window_bounds = array<i64: 16, 128>}]} {
    %c0 = arith.constant 0 : index
    %c0_0 = arith.constant 0 : index
    %0 = vector.load %arg1[%c0, %c0_0] : memref<16x896xbf16, #tpu.memory_space<vmem>>, vector<16x896xbf16>
    %c0_1 = arith.constant 0 : index
    %c0_2 = arith.constant 0 : index
    %1 = vector.load %arg2[%c0_1, %c0_2] : memref<896x256xbf16, #tpu.memory_space<vmem>>, vector<896x256xbf16>
    %cst = arith.constant dense<0.000000e+00> : vector<16x256xf32>
    %2 = tpu.matmul %0, %1, %cst {dimension_numbers = #tpu.dot_dimension_numbers<[1], [0], [0], [1], [0, 0, 1, 1], [], []>} : vector<16x896xbf16>, vector<896x256xbf16>, vector<16x256xf32> -> vector<16x256xf32>
    %c0_3 = arith.constant 0 : index
    %c0_4 = arith.constant 0 : index
    %3 = vector.load %arg3[%c0_3, %c0_4] : memref<1x256xf32, #tpu.memory_space<vmem>>, vector<1x256xf32>
    %4 = vector.broadcast %3 : vector<1x256xf32> to vector<16x256xf32>
    %5 = arith.addf %2, %4 : vector<16x256xf32>
    %cst_5 = arith.constant 0.000000e+00 : f32
    %6 = vector.broadcast %cst_5 : f32 to vector<16x256xf32>
    %7 = arith.maximumf %5, %6 : vector<16x256xf32>
    %8 = arith.truncf %7 : vector<16x256xf32> to vector<16x256xbf16>
    %c0_6 = arith.constant 0 : index
    %c0_7 = arith.constant 0 : index
    %9 = vector.load %arg4[%c0_6, %c0_7] : memref<256x128xbf16, #tpu.memory_space<vmem>>, vector<256x128xbf16>
    %cst_8 = arith.constant dense<0.000000e+00> : vector<16x128xf32>
    %10 = tpu.matmul %8, %9, %cst_8 {dimension_numbers = #tpu.dot_dimension_numbers<[1], [0], [0], [1], [0, 0, 1, 1], [], []>} : vector<16x256xbf16>, vector<256x128xbf16>, vector<16x128xf32> -> vector<16x128xf32>
    %c0_9 = arith.constant 0 : index
    %c0_10 = arith.constant 0 : index
    %11 = vector.load %arg5[%c0_9, %c0_10] : memref<1x128xf32, #tpu.memory_space<vmem>>, vector<1x128xf32>
    %12 = vector.broadcast %11 : vector<1x128xf32> to vector<16x128xf32>
    %13 = arith.addf %10, %12 : vector<16x128xf32>
    %cst_11 = arith.constant 0.000000e+00 : f32
    %14 = vector.broadcast %cst_11 : f32 to vector<16x128xf32>
    %15 = arith.maximumf %13, %14 : vector<16x128xf32>
    %16 = arith.truncf %15 : vector<16x128xf32> to vector<16x128xbf16>
    %c0_12 = arith.constant 0 : index
    %c0_13 = arith.constant 0 : index
    %17 = vector.load %arg6[%c0_12, %c0_13] : memref<128x128xbf16, #tpu.memory_space<vmem>>, vector<128x128xbf16>
    %cst_14 = arith.constant dense<0.000000e+00> : vector<16x128xf32>
    %18 = tpu.matmul %16, %17, %cst_14 {dimension_numbers = #tpu.dot_dimension_numbers<[1], [0], [0], [1], [0, 0, 1, 1], [], []>} : vector<16x128xbf16>, vector<128x128xbf16>, vector<16x128xf32> -> vector<16x128xf32>
    %c0_15 = arith.constant 0 : index
    %c0_16 = arith.constant 0 : index
    %19 = vector.load %arg7[%c0_15, %c0_16] : memref<1x128xf32, #tpu.memory_space<vmem>>, vector<1x128xf32>
    %20 = vector.broadcast %19 : vector<1x128xf32> to vector<16x128xf32>
    %21 = arith.addf %18, %20 : vector<16x128xf32>
    %c0_17 = arith.constant 0 : index
    %c0_18 = arith.constant 0 : index
    %22 = vector.load %arg8[%c0_17, %c0_18] : memref<16x128xf32, #tpu.memory_space<vmem>>, vector<16x128xf32>
    tpu.vector_store %arg8[%c0_17, %c0_18], %21 {strides = array<i32>} : memref<16x128xf32, #tpu.memory_space<vmem>>, vector<16x128xf32>,
    return
  }
  func.func @transform_0(%arg0: i32) -> (i32, i32) {
    %c0_i32 = arith.constant 0 : i32
    %c0_i32_0 = arith.constant 0 : i32
    return %arg0, %c0_i32 : i32, i32
  }
  func.func @transform_1(%arg0: i32) -> (i32, i32) {
    %c0_i32 = arith.constant 0 : i32
    %c0_i32_0 = arith.constant 0 : i32
    %c0_i32_1 = arith.constant 0 : i32
    return %c0_i32, %c0_i32_0 : i32, i32
  }
  func.func @transform_2(%arg0: i32) -> (i32, i32) {
    %c0_i32 = arith.constant 0 : i32
    %c0_i32_0 = arith.constant 0 : i32
    %c0_i32_1 = arith.constant 0 : i32
    return %c0_i32, %c0_i32_0 : i32, i32
  }
  func.func @transform_3(%arg0: i32) -> (i32, i32) {
    %c0_i32 = arith.constant 0 : i32
    %c0_i32_0 = arith.constant 0 : i32
    %c0_i32_1 = arith.constant 0 : i32
    return %c0_i32, %c0_i32_0 : i32, i32
  }
  func.func @transform_4(%arg0: i32) -> (i32, i32) {
    %c0_i32 = arith.constant 0 : i32
    %c0_i32_0 = arith.constant 0 : i32
    %c0_i32_1 = arith.constant 0 : i32
    return %c0_i32, %c0_i32_0 : i32, i32
  }
  func.func @transform_5(%arg0: i32) -> (i32, i32) {
    %c0_i32 = arith.constant 0 : i32
    %c0_i32_0 = arith.constant 0 : i32
    %c0_i32_1 = arith.constant 0 : i32
    return %c0_i32, %c0_i32_0 : i32, i32
  }
  func.func @transform_6(%arg0: i32) -> (i32, i32) {
    %c0_i32 = arith.constant 0 : i32
    %c0_i32_0 = arith.constant 0 : i32
    %c0_i32_1 = arith.constant 0 : i32
    return %c0_i32, %c0_i32_0 : i32, i32
  }
  func.func @transform_7(%arg0: i32) -> (i32, i32) {
    %c0_i32 = arith.constant 0 : i32
    %c0_i32_0 = arith.constant 0 : i32
    return %arg0, %c0_i32 : i32, i32
  }
}

</mosaic_0001>

<bundles_post_ra>
// kernel: tpu_custom_call.1
= control target key start
LH: loop header
LB: loop body
LE: loop exit
PB: predicated region body
PF: predicated region fallthrough
CT: control target
= control target key end

     0   :  { %12 = vsyncpa [#allocation3], 0  ;;  %s2286_s0 = inlined_call_operand.hbm [shape: bf16[16,896], index: 0, kind: input, shape index: {}]   ;;  %s2287_s1 = inlined_call_operand.hbm [shape: bf16[896,256], index: 1, kind: input, shape index: {}]   ;;  %s2288_s2 = inlined_call_operand.hbm [shape: f32[1,256], index: 2, kind: input, shape index: {}]   ;;  %s2289_s3 = inlined_call_operand.hbm [shape: bf16[256,128], index: 3, kind: input, shape index: {}]   ;;  %s2290_s4 = inlined_call_operand.vmem [shape: f32[1,128], index: 4, kind: input, shape index: {}]   ;;  %s2291_s5 = inlined_call_operand.hbm [shape: bf16[128,128], index: 5, kind: input, shape index: {}]   ;;  %s2292_s6 = inlined_call_operand.vmem [shape: f32[1,128], index: 6, kind: input, shape index: {}]   ;;  %s2293_s7 = inlined_call_operand.hbm [shape: f32[16,128], index: 7, kind: output, shape index: {}]  }
   0x1   :  { %13 = vsyncpa [#allocation6], 0 }
   0x2   :  { %14 = vsyncpa [#allocation9], 0  ;;  %s33_s26 = sshll.u32 %s2287_s1, 4  ;;  %s34_s26 = int_to_ptr.hbm [resolvable:$true] %s33_s26 }
   0x3   :  { %15 = vsyncpa [#allocation4], 0  ;;  %s2176_s27 = smov [#allocation5]   ;;  %s57_s8 = sshll.u32 %s2289_s3, 4  ;;  %s58_s8 = int_to_ptr.hbm [resolvable:$true] %s57_s8 }
   0x4   :  { %s35_s28 = sshll.u32 %s2176_s27, 4  ;;  %s2177_s9 = smov 128   ;;  %s36_s28 = int_to_ptr.vmem [resolvable:$true] %s35_s28 }
   0x5   :  { %s2178_s10 = smov 8   ;;  %s2179_s11 = smov [#allocation8]  }
   0x6   :  { %41 = dma.hbm_to_vmem [thread:$0]  %s34_s26, 14336, %s36_s28, [#allocation6], %s2177_s9, %s2177_s9, %s2178_s10  }
   0x7   :  { %s59_s12 = sshll.u32 %s2179_s11, 4  ;;  %s2180_s1 = smov 64   ;;  %s60_s12 = int_to_ptr.vmem [resolvable:$true] %s59_s12 }
   0x8   :  { %s2181_s13 = smov 4   ;;  %s20_s16 = sshll.u32 %s2286_s0, 4  ;;  %s21_s16 = int_to_ptr.hbm [resolvable:$true] %s20_s16 }
   0x9   :  { %65 = dma.hbm_to_vmem [thread:$0]  %s58_s8, 2048, %s60_s12, [#allocation9], %s2180_s1, %s2180_s1, %s2181_s13  }
   0xa   :  { %s2182_s17 = smov [#allocation2]   ;;  %s47_s20 = sshll.u32 %s2288_s2, 4  ;;  %s48_s20 = int_to_ptr.hbm [resolvable:$true] %s47_s20 }
   0xb   :  { %s22_s3 = sshll.u32 %s2182_s17, 4  ;;  %s2183_s21 = smov 448   ;;  %s23_s3 = int_to_ptr.vmem [resolvable:$true] %s22_s3 }
   0xc   :  { %s2184_s22 = smov 28   ;;  %s2185_s23 = smov [#allocation7]  }
   0xd   :  { %28 = dma.hbm_to_vmem [thread:$0]  %s21_s16, 896, %s23_s3, [#allocation3], %s2183_s21, %s2183_s21, %s2184_s22  }
   0xe   :  { %s49_s24 = sshll.u32 %s2185_s23, 4  ;;  %s72_s27 = sshll.u32 %s2291_s5, 4  ;;  %s50_s24 = int_to_ptr.vmem [resolvable:$true] %s49_s24  ;;  %s73_s27 = int_to_ptr.hbm [resolvable:$true] %s72_s27 }
   0xf   :  { %52 = dma.hbm_to_vmem [thread:$0]  %s48_s20, 32, %s50_s24, [#allocation6]  }
  0x10   :  { %s2186_s0 = smov [#allocation10]  }
  0x11   :  { %s74_s28 = sshll.u32 %s2186_s0, 4  ;;  %s75_s28 = int_to_ptr.vmem [resolvable:$true] %s74_s28 }
  0x12   :  { %80 = dma.hbm_to_vmem [thread:$0]  %s73_s27, 1024, %s75_s28, [#allocation9], %s2180_s1, %s2180_s1, %s2181_s13  }
  0x13   :  { %2168 = dma.done.wait [#allocation3], 896  }
  0x14   :  { %2169 = vsyncadd [#allocation3], 4294966400 }
  0x15   :  { %2170 = dma.done.wait [#allocation6], 14368  }
  0x16   :  { %2171 = vsyncadd [#allocation6], 4294952928 }
  0x17   :  { %2172 = dma.done.wait [#allocation9], 3072  }
  0x18   :  { %2173 = vsyncadd [#allocation9], 4294964224  ;;  %v1381_v0 = vld [vmem:[#allocation5 + $0x70] sm:$0xf]  ;;  %v1889_v1 = vld [vmem:[#allocation5 + $0x74] sm:$0xf0] }
  0x19   :  { %v1445_v2 = vld [vmem:[#allocation5 + $0xf0] sm:$0xf]  ;;  %v1382_v3 = vor.u32 %v1889_v1, %v1381_v0  ;;  %v1905_v4 = vld [vmem:[#allocation5 + $0xf4] sm:$0xf0]  ;;  %v1373_v9 = vld [vmem:[#allocation5 + $0x60] sm:$0xf] }
  0x1a   :  { %v1509_v5 = vld [vmem:[#allocation5 + $0x170] sm:$0xf]  ;;  %v1921_v6 = vld [vmem:[#allocation5 + $0x174] sm:$0xf0]  ;;  %v1446_v7 = vor.u32 %v1905_v4, %v1445_v2  ;;  %v1887_v10 = vld [vmem:[#allocation5 + $0x64] sm:$0xf0] }
  0x1b   :  { %v1510_v8 = vor.u32 %v1921_v6, %v1509_v5  ;;  %v1437_v11 = vld [vmem:[#allocation5 + $0xe0] sm:$0xf]  ;;  %825 = vmatpush.bf16.msra.mxu0 %v1382_v3  ;;  %v1374_v12 = vor.u32 %v1887_v10, %v1373_v9  ;;  %v1903_v13 = vld [vmem:[#allocation5 + $0xe4] sm:$0xf0]  ;;  %v1573_v18 = vld [vmem:[#allocation5 + $0x1f0] sm:$0xf] }
  0x1c   :  { %v1501_v14 = vld [vmem:[#allocation5 + $0x160] sm:$0xf]  ;;  %v1919_v15 = vld [vmem:[#allocation5 + $0x164] sm:$0xf0]  ;;  %839 = vmatpush.bf16.msra.mxu1 %v1446_v7  ;;  %v1438_v16 = vor.u32 %v1903_v13, %v1437_v11  ;;  %v1937_v19 = vld [vmem:[#allocation5 + $0x1f4] sm:$0xf0] }
  0x1d   :  { %853 = vmatpush.bf16.msra.mxu2 %v1510_v8  ;;  %v1502_v17 = vor.u32 %v1919_v15, %v1501_v14  ;;  %v1365_v20 = vld [vmem:[#allocation5 + $0x50] sm:$0xf]  ;;  %v1574_v21 = vor.u32 %v1937_v19, %v1573_v18  ;;  %v1885_v22 = vld [vmem:[#allocation5 + $0x54] sm:$0xf0]  ;;  %v1565_v27 = vld [vmem:[#allocation5 + $0x1e0] sm:$0xf] }
  0x1e   :  { %v1429_v23 = vld [vmem:[#allocation5 + $0xd0] sm:$0xf]  ;;  %v1901_v24 = vld [vmem:[#allocation5 + $0xd4] sm:$0xf0]  ;;  %v1366_v28 = vor.u32 %v1885_v22, %v1365_v20  ;;  %v1935_v29 = vld [vmem:[#allocation5 + $0x1e4] sm:$0xf0] }
  0x1f   :  { %v1493_v25 = vld [vmem:[#allocation5 + $0x150] sm:$0xf]  ;;  %v1917_v26 = vld [vmem:[#allocation5 + $0x154] sm:$0xf0]  ;;  %826 = vmatpush.bf16.msra.mxu0 %v1374_v12  ;;  %867 = vmatpush.bf16.msra.mxu3 %v1574_v21  ;;  %v1357_v30 = vld [vmem:[#allocation5 + $0x40] sm:$0xf]  ;;  %v1430_v32 = vor.u32 %v1901_v24, %v1429_v23  ;;  %v1566_v34 = vor.u32 %v1935_v29, %v1565_v27 }
  0x20   :  { %v1883_v31 = vld [vmem:[#allocation5 + $0x44] sm:$0xf0]  ;;  %840 = vmatpush.bf16.msra.mxu1 %v1438_v16  ;;  %v1494_v33 = vor.u32 %v1917_v26, %v1493_v25  ;;  %v1421_v35 = vld [vmem:[#allocation5 + $0xc0] sm:$0xf]  ;;  %v1557_v39 = vld [vmem:[#allocation5 + $0x1d0] sm:$0xf] }
  0x21   :  { %854 = vmatpush.bf16.msra.mxu2 %v1502_v17  ;;  %v1899_v36 = vld [vmem:[#allocation5 + $0xc4] sm:$0xf0]  ;;  %v1485_v37 = vld [vmem:[#allocation5 + $0x140] sm:$0xf]  ;;  %v1933_v40 = vld [vmem:[#allocation5 + $0x1d4] sm:$0xf0]  ;;  %v1358_v41 = vor.u32 %v1883_v31, %v1357_v30 }
  0x22   :  { %v1915_v38 = vld [vmem:[#allocation5 + $0x144] sm:$0xf0]  ;;  %v1558_v42 = vor.u32 %v1933_v40, %v1557_v39  ;;  %v1349_v43 = vld [vmem:[#allocation5 + $0x30] sm:$0xf]  ;;  %v1881_v44 = vld [vmem:[#allocation5 + $0x34] sm:$0xf0]  ;;  %v1422_v45 = vor.u32 %v1899_v36, %v1421_v35 }
  0x23   :  { %827 = vmatpush.bf16.msra.mxu0 %v1366_v28  ;;  %868 = vmatpush.bf16.msra.mxu3 %v1566_v34  ;;  %v1486_v46 = vor.u32 %v1915_v38, %v1485_v37  ;;  %v1413_v47 = vld [vmem:[#allocation5 + $0xb0] sm:$0xf]  ;;  %v1549_v48 = vld [vmem:[#allocation5 + $0x1c0] sm:$0xf]  ;;  %v1931_v49 = vld [vmem:[#allocation5 + $0x1c4] sm:$0xf0]  ;;  %v1350_v53 = vor.u32 %v1881_v44, %v1349_v43 }
  0x24   :  { %841 = vmatpush.bf16.msra.mxu1 %v1430_v32  ;;  %v1897_v50 = vld [vmem:[#allocation5 + $0xb4] sm:$0xf0]  ;;  %v1477_v51 = vld [vmem:[#allocation5 + $0x130] sm:$0xf]  ;;  %v1550_v54 = vor.u32 %v1931_v49, %v1549_v48  ;;  %v1341_v55 = vld [vmem:[#allocation5 + $0x20] sm:$0xf] }
  0x25   :  { %855 = vmatpush.bf16.msra.mxu2 %v1494_v33  ;;  %v1913_v52 = vld [vmem:[#allocation5 + $0x134] sm:$0xf0]  ;;  %v1879_v56 = vld [vmem:[#allocation5 + $0x24] sm:$0xf0]  ;;  %v1414_v57 = vor.u32 %v1897_v50, %v1413_v47  ;;  %v1405_v59 = vld [vmem:[#allocation5 + $0xa0] sm:$0xf] }
  0x26   :  { %v1478_v58 = vor.u32 %v1913_v52, %v1477_v51  ;;  %v1541_v60 = vld [vmem:[#allocation5 + $0x1b0] sm:$0xf]  ;;  %v1929_v61 = vld [vmem:[#allocation5 + $0x1b4] sm:$0xf0]  ;;  %v1895_v62 = vld [vmem:[#allocation5 + $0xa4] sm:$0xf0]  ;;  %v1342_v1 = vor.u32 %v1879_v56, %v1341_v55 }
  0x27   :  { %828 = vmatpush.bf16.msra.mxu0 %v1358_v41  ;;  %869 = vmatpush.bf16.msra.mxu3 %v1558_v42  ;;  %v1469_v63 = vld [vmem:[#allocation5 + $0x120] sm:$0xf]  ;;  %v1911_v0 = vld [vmem:[#allocation5 + $0x124] sm:$0xf0]  ;;  %v1542_v2 = vor.u32 %v1929_v61, %v1541_v60  ;;  %v1333_v3 = vld [vmem:[#allocation5 + $0x10] sm:$0xf]  ;;  %v1406_v5 = vor.u32 %v1895_v62, %v1405_v59 }
  0x28   :  { %842 = vmatpush.bf16.msra.mxu1 %v1422_v45  ;;  %v1877_v4 = vld [vmem:[#allocation5 + $0x14] sm:$0xf0]  ;;  %v1470_v6 = vor.u32 %v1911_v0, %v1469_v63  ;;  %v1397_v7 = vld [vmem:[#allocation5 + $0x90] sm:$0xf]  ;;  %v1533_v8 = vld [vmem:[#allocation5 + $0x1a0] sm:$0xf] }
  0x29   :  { %856 = vmatpush.bf16.msra.mxu2 %v1486_v46  ;;  %v1927_v9 = vld [vmem:[#allocation5 + $0x1a4] sm:$0xf0]  ;;  %v1893_v10 = vld [vmem:[#allocation5 + $0x94] sm:$0xf0]  ;;  %v1461_v11 = vld [vmem:[#allocation5 + $0x110] sm:$0xf]  ;;  %v1334_v13 = vor.u32 %v1877_v4, %v1333_v3 }
  0x2a   :  { %v1909_v12 = vld [vmem:[#allocation5 + $0x114] sm:$0xf0]  ;;  %v1534_v14 = vor.u32 %v1927_v9, %v1533_v8  ;;  %v1325_v15 = vld [vmem:[#allocation5] sm:$0xf]  ;;  %v1875_v16 = vld [vmem:[#allocation5 + $0x4] sm:$0xf0]  ;;  %v1398_v18 = vor.u32 %v1893_v10, %v1397_v7 }
  0x2b   :  { %829 = vmatpush.bf16.msra.mxu0 %v1350_v53  ;;  %870 = vmatpush.bf16.msra.mxu3 %v1550_v54  ;;  %v1389_v17 = vld [vmem:[#allocation5 + $0x80] sm:$0xf]  ;;  %v1462_v19 = vor.u32 %v1909_v12, %v1461_v11  ;;  %v1891_v20 = vld [vmem:[#allocation5 + $0x84] sm:$0xf0]  ;;  %v1525_v21 = vld [vmem:[#allocation5 + $0x190] sm:$0xf]  ;;  %v1326_v29 = vor.u32 %v1875_v16, %v1325_v15 }
  0x2c   :  { %843 = vmatpush.bf16.msra.mxu1 %v1414_v57  ;;  %v1925_v22 = vld [vmem:[#allocation5 + $0x194] sm:$0xf0]  ;;  %v1453_v23 = vld [vmem:[#allocation5 + $0x100] sm:$0xf]  ;;  %v1907_v24 = vld [vmem:[#allocation5 + $0x104] sm:$0xf0]  ;;  %v1390_v33 = vor.u32 %v1891_v20, %v1389_v17 }
  0x2d   :  { %857 = vmatpush.bf16.msra.mxu2 %v1478_v58  ;;  %v1637_v25 = vld [vmem:[#allocation5 + $0x270] sm:$0xf]  ;;  %v1953_v26 = vld [vmem:[#allocation5 + $0x274] sm:$0xf0]  ;;  %v1526_v30 = vor.u32 %v1925_v22, %v1525_v21  ;;  %v1454_v34 = vor.u32 %v1907_v24, %v1453_v23  ;;  %v1517_v35 = vld [vmem:[#allocation5 + $0x180] sm:$0xf] }
  0x2e   :  { %v1701_v27 = vld [vmem:[#allocation5 + $0x2f0] sm:$0xf]  ;;  %v1969_v28 = vld [vmem:[#allocation5 + $0x2f4] sm:$0xf0]  ;;  %v1923_v36 = vld [vmem:[#allocation5 + $0x184] sm:$0xf0]  ;;  %v1638_v38 = vor.u32 %v1953_v26, %v1637_v25 }
  0x2f   :  { %830 = vmatpush.bf16.msra.mxu0 %v1342_v1  ;;  %871 = vmatpush.bf16.msra.mxu3 %v1542_v2  ;;  %v1765_v31 = vld [vmem:[#allocation5 + $0x370] sm:$0xf]  ;;  %v1985_v32 = vld [vmem:[#allocation5 + $0x374] sm:$0xf0]  ;;  %v1629_v37 = vld [vmem:[#allocation5 + $0x260] sm:$0xf]  ;;  %v1702_v39 = vor.u32 %v1969_v28, %v1701_v27  ;;  %v1518_v47 = vor.u32 %v1923_v36, %v1517_v35 }
  0x30   :  { %844 = vmatpush.bf16.msra.mxu1 %v1406_v5  ;;  %v1951_v40 = vld [vmem:[#allocation5 + $0x264] sm:$0xf0]  ;;  %v1888_v41 = vld [vmem:[#allocation5 + $0x74] sm:$0xf]  ;;  %v1383_v42 = vld [vmem:[#allocation5 + $0x78] sm:$0xf0]  ;;  %v1766_v43 = vor.u32 %v1985_v32, %v1765_v31 }
  0x31   :  { %858 = vmatpush.bf16.msra.mxu2 %v1470_v6  ;;  %v1693_v44 = vld [vmem:[#allocation5 + $0x2e0] sm:$0xf]  ;;  %v1967_v45 = vld [vmem:[#allocation5 + $0x2e4] sm:$0xf0]  ;;  %v1870_v50 = vld [vmem:[#allocation2 + $0x18] sm:$0xf0]  ;;  %v1386_v51 = vor.u32 %v1888_v41, %v1383_v42  ;;  %v1630_v56 = vor.u32 %v1951_v40, %v1629_v37 }
  0x32   :  { %v1757_v46 = vld [vmem:[#allocation5 + $0x360] sm:$0xf]  ;;  %v1983_v48 = vld [vmem:[#allocation5 + $0x364] sm:$0xf0]  ;;  %v1621_v52 = vld [vmem:[#allocation5 + $0x250] sm:$0xf]  ;;  %v1694_v57 = vor.u32 %v1967_v45, %v1693_v44 }
  0x33   :  { %831 = vmatpush.bf16.msra.mxu0 %v1334_v13  ;;  %872 = vmatpush.bf16.msra.mxu3 %v1534_v14  ;;  %v1297_v49 = vld [vmem:[#allocation2] sm:$0xf]  ;;  %v1305_v54 = vld [vmem:[#allocation2 + $0x8] sm:$0xf]  ;;  %v1871_v55 = vld [vmem:[#allocation2 + $0x20] sm:$0xf0]  ;;  %v1758_v62 = vor.u32 %v1983_v48, %v1757_v46 }
  0x34   :  { %845 = vmatpush.bf16.msra.mxu1 %v1398_v18  ;;  %v2246_v53 = vor.u32 %v1870_v50, %v1297_v49  ;;  %v1949_v58 = vld [vmem:[#allocation5 + $0x254] sm:$0xf0]  ;;  %v1886_v59 = vld [vmem:[#allocation5 + $0x64] sm:$0xf]  ;;  %v1375_v60 = vld [vmem:[#allocation5 + $0x68] sm:$0xf0]  ;;  %v2248_v61 = vor.u32 %v1871_v55, %v1305_v54 }
  0x35   :  { %859 = vmatpush.bf16.msra.mxu2 %v1462_v19  ;;  %v1685_v63 = vld [vmem:[#allocation5 + $0x2d0] sm:$0xf]  ;;  %v1965_v0 = vld [vmem:[#allocation5 + $0x2d4] sm:$0xf0]  ;;  %v1867_v1 = vld [vmem:[#allocation2 + $0x4] sm:$0xf]  ;;  %v1378_v5 = vor.u32 %v1886_v59, %v1375_v60  ;;  %v1622_v9 = vor.u32 %v1949_v58, %v1621_v52 }
  0x36   :  { %v1749_v2 = vld [vmem:[#allocation5 + $0x350] sm:$0xf]  ;;  %v1981_v3 = vld [vmem:[#allocation5 + $0x354] sm:$0xf0]  ;;  %v1299_v4 = vld [vmem:[#allocation2 + $0x1c] sm:$0xf0]  ;;  %v1686_v10 = vor.u32 %v1965_v0, %v1685_v63 }
  0x37   :  { %832 = vmatpush.bf16.msra.mxu0 %v1326_v29  ;;  %873 = vmatpush.bf16.msra.mxu3 %v1526_v30  ;;  %v1613_v6 = vld [vmem:[#allocation5 + $0x240] sm:$0xf]  ;;  %v1947_v7 = vld [vmem:[#allocation5 + $0x244] sm:$0xf0]  ;;  %v2252_v8 = vor.u32 %v1867_v1, %v1299_v4  ;;  %v1884_v12 = vld [vmem:[#allocation5 + $0x54] sm:$0xf]  ;;  %v1750_v14 = vor.u32 %v1981_v3, %v1749_v2 }
  0x38   :  { %846 = vmatpush.bf16.msra.mxu1 %v1390_v33  ;;  %v1677_v11 = vld [vmem:[#allocation5 + $0x2c0] sm:$0xf]  ;;  %v1367_v13 = vld [vmem:[#allocation5 + $0x58] sm:$0xf0]  ;;  %v1963_v15 = vld [vmem:[#allocation5 + $0x2c4] sm:$0xf0]  ;;  %v1614_v22 = vor.u32 %v1947_v7, %v1613_v6 }
  0x39   :  { %860 = vmatpush.bf16.msra.mxu2 %v1454_v34  ;;  %v1868_v16 = vld [vmem:[#allocation2 + $0xc] sm:$0xf]  ;;  %v1307_v17 = vld [vmem:[#allocation2 + $0x24] sm:$0xf0]  ;;  %v1741_v18 = vld [vmem:[#allocation5 + $0x340] sm:$0xf]  ;;  %v1370_v21 = vor.u32 %v1884_v12, %v1367_v13  ;;  %v1678_v23 = vor.u32 %v1963_v15, %v1677_v11 }
  0x3a   :  { %833 = vmatmul.bf16.vlgmr.msra.gmra.mxu0 %v2246_v53  ;;  %v1979_v19 = vld [vmem:[#allocation5 + $0x344] sm:$0xf0]  ;;  %v2255_v20 = vor.u32 %v1868_v16, %v1307_v17  ;;  %v1605_v24 = vld [vmem:[#allocation5 + $0x230] sm:$0xf]  ;;  %v1882_v25 = vld [vmem:[#allocation5 + $0x44] sm:$0xf] }
  0x3b   :  { %881 = vmatpush.bf16.msrb.mxu0 %v1638_v38  ;;  %874 = vmatpush.bf16.msra.mxu3 %v1518_v47  ;;  %v1359_v26 = vld [vmem:[#allocation5 + $0x48] sm:$0xf0]  ;;  %v1742_v27 = vor.u32 %v1979_v19, %v1741_v18  ;;  %v1945_v28 = vld [vmem:[#allocation5 + $0x234] sm:$0xf0]  ;;  %v1669_v29 = vld [vmem:[#allocation5 + $0x2b0] sm:$0xf] }
  0x3c   :  { %895 = vmatpush.bf16.msrb.mxu1 %v1702_v39  ;;  %861 = vmatmul.bf16.vlgmr.msra.gmra.mxu2 %v2248_v61  ;;  %v1961_v30 = vld [vmem:[#allocation5 + $0x2b4] sm:$0xf0]  ;;  %v1733_v31 = vld [vmem:[#allocation5 + $0x330] sm:$0xf]  ;;  %v1362_v33 = vor.u32 %v1882_v25, %v1359_v26  ;;  %v1606_v34 = vor.u32 %v1945_v28, %v1605_v24  ;;  %v1597_v36 = vld [vmem:[#allocation5 + $0x220] sm:$0xf] }
  0x3d   :  { %909 = vmatpush.bf16.msrb.mxu2 %v1766_v43  ;;  %847 = vmatmul.bf16.vlgmr.msra.gmra.mxu1 %v2252_v8  ;;  %v1977_v32 = vld [vmem:[#allocation5 + $0x334] sm:$0xf0]  ;;  %v1670_v35 = vor.u32 %v1961_v30, %v1669_v29  ;;  %v1880_v37 = vld [vmem:[#allocation5 + $0x34] sm:$0xf]  ;;  %v1351_v38 = vld [vmem:[#allocation5 + $0x38] sm:$0xf0] }
  0x3e   :  { %875 = vmatmul.bf16.vlgmr.msra.gmra.mxu3 %v2255_v20  ;;  %v1734_v39 = vor.u32 %v1977_v32, %v1733_v31  ;;  %v1943_v40 = vld [vmem:[#allocation5 + $0x224] sm:$0xf0]  ;;  %v1661_v41 = vld [vmem:[#allocation5 + $0x2a0] sm:$0xf]  ;;  %v1354_v45 = vor.u32 %v1880_v37, %v1351_v38  ;;  %v1589_v48 = vld [vmem:[#allocation5 + $0x210] sm:$0xf] }
  0x3f   :  { %923 = vmatpush.bf16.msrb.mxu3 %v1386_v51  ;;  %882 = vmatpush.bf16.msrb.mxu0 %v1630_v56  ;;  %v1959_v42 = vld [vmem:[#allocation5 + $0x2a4] sm:$0xf0]  ;;  %v1725_v43 = vld [vmem:[#allocation5 + $0x320] sm:$0xf]  ;;  %v1598_v46 = vor.u32 %v1943_v40, %v1597_v36  ;;  %v1878_v49 = vld [vmem:[#allocation5 + $0x24] sm:$0xf] }
  0x40   :  { %896 = vmatpush.bf16.msrb.mxu1 %v1694_v57  ;;  %v1975_v44 = vld [vmem:[#allocation5 + $0x324] sm:$0xf0]  ;;  %v1662_v47 = vor.u32 %v1959_v42, %v1661_v41  ;;  %v1343_v50 = vld [vmem:[#allocation5 + $0x28] sm:$0xf0]  ;;  %v1941_v52 = vld [vmem:[#allocation5 + $0x214] sm:$0xf0] }
  0x41   :  { %910 = vmatpush.bf16.msrb.mxu2 %v1758_v62  ;;  %v1726_v51 = vor.u32 %v1975_v44, %v1725_v43  ;;  %v1653_v54 = vld [vmem:[#allocation5 + $0x290] sm:$0xf]  ;;  %v1957_v55 = vld [vmem:[#allocation5 + $0x294] sm:$0xf0]  ;;  %v1346_v58 = vor.u32 %v1878_v49, %v1343_v50  ;;  %v1581_v59 = vld [vmem:[#allocation5 + $0x200] sm:$0xf]  ;;  %v1590_v0 = vor.u32 %v1941_v52, %v1589_v48 }
  0x42   :  { %v1717_v56 = vld [vmem:[#allocation5 + $0x310] sm:$0xf]  ;;  %v1973_v57 = vld [vmem:[#allocation5 + $0x314] sm:$0xf0]  ;;  %v1939_v60 = vld [vmem:[#allocation5 + $0x204] sm:$0xf0]  ;;  %v1654_v1 = vor.u32 %v1957_v55, %v1653_v54 }
  0x43   :  { %924 = vmatpush.bf16.msrb.mxu3 %v1378_v5  ;;  %883 = vmatpush.bf16.msrb.mxu0 %v1622_v9  ;;  %v1645_v62 = vld [vmem:[#allocation5 + $0x280] sm:$0xf]  ;;  %v1955_v63 = vld [vmem:[#allocation5 + $0x284] sm:$0xf0]  ;;  %v1876_v4 = vld [vmem:[#allocation5 + $0x14] sm:$0xf]  ;;  %v1718_v6 = vor.u32 %v1973_v57, %v1717_v56  ;;  %v1582_v19 = vor.u32 %v1939_v60, %v1581_v59 }
  0x44   :  { %897 = vmatpush.bf16.msrb.mxu1 %v1686_v10  ;;  %v1709_v2 = vld [vmem:[#allocation5 + $0x300] sm:$0xf]  ;;  %v1971_v3 = vld [vmem:[#allocation5 + $0x304] sm:$0xf0]  ;;  %v1335_v5 = vld [vmem:[#allocation5 + $0x18] sm:$0xf0] }
  0x45   :  { %911 = vmatpush.bf16.msrb.mxu2 %v1750_v14  ;;  %v1904_v7 = vld [vmem:[#allocation5 + $0xf4] sm:$0xf]  ;;  %v1447_v9 = vld [vmem:[#allocation5 + $0xf8] sm:$0xf0]  ;;  %v1313_v12 = vld [vmem:[#allocation2 + $0x10] sm:$0xf]  ;;  %v1338_v14 = vor.u32 %v1876_v4, %v1335_v5  ;;  %v1710_v25 = vor.u32 %v1971_v3, %v1709_v2 }
  0x46   :  { %v1920_v10 = vld [vmem:[#allocation5 + $0x174] sm:$0xf]  ;;  %v1511_v11 = vld [vmem:[#allocation5 + $0x178] sm:$0xf0]  ;;  %v1321_v15 = vld [vmem:[#allocation2 + $0x18] sm:$0xf]  ;;  %v1450_v26 = vor.u32 %v1904_v7, %v1447_v9 }
  0x47   :  { %925 = vmatpush.bf16.msrb.mxu3 %v1370_v21  ;;  %884 = vmatpush.bf16.msrb.mxu0 %v1614_v22  ;;  %v1872_v13 = vld [vmem:[#allocation2 + $0x28] sm:$0xf0]  ;;  %v1873_v16 = vld [vmem:[#allocation2 + $0x30] sm:$0xf0]  ;;  %v1646_v21 = vor.u32 %v1955_v63, %v1645_v62  ;;  %v1874_v24 = vld [vmem:[#allocation5 + $0x4] sm:$0xf]  ;;  %v1514_v30 = vor.u32 %v1920_v10, %v1511_v11 }
  0x48   :  { %898 = vmatpush.bf16.msrb.mxu1 %v1678_v23  ;;  %v1936_v17 = vld [vmem:[#allocation5 + $0x1f4] sm:$0xf]  ;;  %v1575_v18 = vld [vmem:[#allocation5 + $0x1f8] sm:$0xf0]  ;;  %v1315_v23 = vld [vmem:[#allocation2 + $0x2c] sm:$0xf0]  ;;  %v2262_v40 = vor.u32 %v1873_v16, %v1321_v15 }
  0x49   :  { %912 = vmatpush.bf16.msrb.mxu2 %v1742_v27  ;;  %v1869_v22 = vld [vmem:[#allocation2 + $0x14] sm:$0xf]  ;;  %v1327_v27 = vld [vmem:[#allocation5 + $0x8] sm:$0xf0]  ;;  %v1902_v28 = vld [vmem:[#allocation5 + $0xe4] sm:$0xf]  ;;  %v1578_v31 = vor.u32 %v1936_v17, %v1575_v18 }
  0x4a   :  { %v1439_v29 = vld [vmem:[#allocation5 + $0xe8] sm:$0xf0]  ;;  %v1918_v32 = vld [vmem:[#allocation5 + $0x164] sm:$0xf]  ;;  %v2260_v36 = vor.u32 %v1869_v22, %v1315_v23  ;;  %v1330_v41 = vor.u32 %v1874_v24, %v1327_v27  ;;  %v1900_v44 = vld [vmem:[#allocation5 + $0xd4] sm:$0xf] }
  0x4b   :  { %926 = vmatpush.bf16.msrb.mxu3 %v1362_v33  ;;  %885 = vmatpush.bf16.msrb.mxu0 %v1606_v34  ;;  %v1952_v33 = vld [vmem:[#allocation5 + $0x274] sm:$0xf]  ;;  %v1639_v34 = vld [vmem:[#allocation5 + $0x278] sm:$0xf0]  ;;  %v1503_v37 = vld [vmem:[#allocation5 + $0x168] sm:$0xf0]  ;;  %v1442_v42 = vor.u32 %v1902_v28, %v1439_v29 }
  0x4c   :  { %899 = vmatpush.bf16.msrb.mxu1 %v1670_v35  ;;  %v2258_v35 = vor.u32 %v1872_v13, %v1313_v12  ;;  %v1934_v38 = vld [vmem:[#allocation5 + $0x1e4] sm:$0xf]  ;;  %v1642_v43 = vor.u32 %v1952_v33, %v1639_v34  ;;  %v1916_v48 = vld [vmem:[#allocation5 + $0x154] sm:$0xf]  ;;  %v1631_v50 = vld [vmem:[#allocation5 + $0x268] sm:$0xf0] }
  0x4d   :  { %913 = vmatpush.bf16.msrb.mxu2 %v1734_v39  ;;  %v1567_v39 = vld [vmem:[#allocation5 + $0x1e8] sm:$0xf0]  ;;  %v1950_v49 = vld [vmem:[#allocation5 + $0x264] sm:$0xf]  ;;  %v1932_v52 = vld [vmem:[#allocation5 + $0x1d4] sm:$0xf] }
  0x4e   :  { %v1559_v54 = vld [vmem:[#allocation5 + $0x1d8] sm:$0xf0]  ;;  %v1634_v56 = vor.u32 %v1950_v49, %v1631_v50  ;;  %v1898_v57 = vld [vmem:[#allocation5 + $0xc4] sm:$0xf]  ;;  %v1948_v63 = vld [vmem:[#allocation5 + $0x254] sm:$0xf] }
  0x4f   :  { %927 = vmatpush.bf16.msrb.mxu3 %v1354_v45  ;;  %886 = vmatpush.bf16.msrb.mxu0 %v1598_v46  ;;  %v1431_v45 = vld [vmem:[#allocation5 + $0xd8] sm:$0xf0]  ;;  %v1506_v46 = vor.u32 %v1918_v32, %v1503_v37  ;;  %v1562_v60 = vor.u32 %v1932_v52, %v1559_v54  ;;  %v1914_v62 = vld [vmem:[#allocation5 + $0x144] sm:$0xf]  ;;  %v1551_v3 = vld [vmem:[#allocation5 + $0x1c8] sm:$0xf0] }
  0x50   :  { %900 = vmatpush.bf16.msrb.mxu1 %v1662_v47  ;;  %v1570_v47 = vor.u32 %v1934_v38, %v1567_v39  ;;  %v1434_v55 = vor.u32 %v1900_v44, %v1431_v45  ;;  %v1930_v2 = vld [vmem:[#allocation5 + $0x1c4] sm:$0xf]  ;;  %v1415_v7 = vld [vmem:[#allocation5 + $0xb8] sm:$0xf0]  ;;  %v1912_v11 = vld [vmem:[#allocation5 + $0x134] sm:$0xf] }
  0x51   :  { %914 = vmatpush.bf16.msrb.mxu2 %v1726_v51  ;;  %v1495_v51 = vld [vmem:[#allocation5 + $0x158] sm:$0xf0]  ;;  %v1554_v10 = vor.u32 %v1930_v2, %v1551_v3  ;;  %v1946_v12 = vld [vmem:[#allocation5 + $0x244] sm:$0xf]  ;;  %v1615_v13 = vld [vmem:[#allocation5 + $0x248] sm:$0xf0] }
  0x52   :  { %v1498_v59 = vor.u32 %v1916_v48, %v1495_v51  ;;  %v1928_v15 = vld [vmem:[#allocation5 + $0x1b4] sm:$0xf]  ;;  %v1543_v16 = vld [vmem:[#allocation5 + $0x1b8] sm:$0xf0]  ;;  %v1894_v17 = vld [vmem:[#allocation5 + $0xa4] sm:$0xf]  ;;  %v1618_v18 = vor.u32 %v1946_v12, %v1615_v13 }
  0x53   :  { %928 = vmatpush.bf16.msrb.mxu3 %v1346_v58  ;;  %887 = vmatpush.bf16.msrb.mxu0 %v1590_v0  ;;  %v1423_v58 = vld [vmem:[#allocation5 + $0xc8] sm:$0xf0]  ;;  %v1623_v0 = vld [vmem:[#allocation5 + $0x258] sm:$0xf0]  ;;  %v1944_v22 = vld [vmem:[#allocation5 + $0x234] sm:$0xf]  ;;  %v1546_v24 = vor.u32 %v1928_v15, %v1543_v16 }
  0x54   :  { %901 = vmatpush.bf16.msrb.mxu1 %v1654_v1  ;;  %v1487_v1 = vld [vmem:[#allocation5 + $0x148] sm:$0xf0]  ;;  %v1426_v4 = vor.u32 %v1898_v57, %v1423_v58  ;;  %v1626_v5 = vor.u32 %v1948_v63, %v1623_v0  ;;  %v1926_v27 = vld [vmem:[#allocation5 + $0x1a4] sm:$0xf]  ;;  %v1399_v32 = vld [vmem:[#allocation5 + $0x98] sm:$0xf0] }
  0x55   :  { %915 = vmatpush.bf16.msrb.mxu2 %v1718_v6  ;;  %v1896_v6 = vld [vmem:[#allocation5 + $0xb4] sm:$0xf]  ;;  %v1490_v9 = vor.u32 %v1914_v62, %v1487_v1  ;;  %v1535_v28 = vld [vmem:[#allocation5 + $0x1a8] sm:$0xf0]  ;;  %v1942_v38 = vld [vmem:[#allocation5 + $0x224] sm:$0xf] }
  0x56   :  { %v1538_v34 = vor.u32 %v1926_v27, %v1535_v28  ;;  %v1908_v37 = vld [vmem:[#allocation5 + $0x114] sm:$0xf]  ;;  %v1599_v39 = vld [vmem:[#allocation5 + $0x228] sm:$0xf0]  ;;  %v1906_v48 = vld [vmem:[#allocation5 + $0x104] sm:$0xf] }
  0x57   :  { %929 = vmatpush.bf16.msrb.mxu3 %v1338_v14  ;;  %888 = vmatpush.bf16.msrb.mxu0 %v1582_v19  ;;  %v1479_v14 = vld [vmem:[#allocation5 + $0x138] sm:$0xf0]  ;;  %v1407_v19 = vld [vmem:[#allocation5 + $0xa8] sm:$0xf0]  ;;  %v1602_v45 = vor.u32 %v1942_v38, %v1599_v39  ;;  %v1940_v52 = vld [vmem:[#allocation5 + $0x214] sm:$0xf] }
  0x58   :  { %902 = vmatpush.bf16.msrb.mxu1 %v1646_v21  ;;  %v1910_v21 = vld [vmem:[#allocation5 + $0x124] sm:$0xf]  ;;  %v1482_v23 = vor.u32 %v1912_v11, %v1479_v14  ;;  %v1410_v29 = vor.u32 %v1894_v17, %v1407_v19  ;;  %v1455_v51 = vld [vmem:[#allocation5 + $0x108] sm:$0xf0]  ;;  %v1591_v54 = vld [vmem:[#allocation5 + $0x218] sm:$0xf0] }
  0x59   :  { %916 = vmatpush.bf16.msrb.mxu2 %v1710_v25  ;;  %v1607_v25 = vld [vmem:[#allocation5 + $0x238] sm:$0xf0]  ;;  %v1984_v57 = vld [vmem:[#allocation5 + $0x374] sm:$0xf]  ;;  %v1594_v63 = vor.u32 %v1940_v52, %v1591_v54  ;;  %v1458_v0 = vor.u32 %v1906_v48, %v1455_v51  ;;  %v1938_v2 = vld [vmem:[#allocation5 + $0x204] sm:$0xf] }
  0x5a   :  { %889 = vmatmul.bf16.vlgmr.msrb.gmra.mxu0 %v2258_v35  ;;  %v1767_v58 = vld [vmem:[#allocation5 + $0x378] sm:$0xf0]  ;;  %v1583_v3 = vld [vmem:[#allocation5 + $0x208] sm:$0xf0]  ;;  %v1964_v14 = vld [vmem:[#allocation5 + $0x2d4] sm:$0xf] }
  0x5b   :  { %937 = vmatpush.bf16.msra.mxu0 %v1450_v26  ;;  %903 = vmatmul.bf16.vlgmr.msrb.gmra.mxu1 %v2260_v36  ;;  %v1471_v26 = vld [vmem:[#allocation5 + $0x128] sm:$0xf0]  ;;  %v1586_v11 = vor.u32 %v1938_v2, %v1583_v3  ;;  %v1687_v15 = vld [vmem:[#allocation5 + $0x2d8] sm:$0xf0]  ;;  %v1980_v16 = vld [vmem:[#allocation5 + $0x354] sm:$0xf] }
  0x5c   :  { %951 = vmatpush.bf16.msra.mxu1 %v1514_v30  ;;  %917 = vmatmul.bf16.vlgmr.msrb.gmra.mxu2 %v2262_v40  ;;  %v1610_v30 = vor.u32 %v1944_v22, %v1607_v25  ;;  %v1474_v33 = vor.u32 %v1910_v21, %v1471_v26  ;;  %v1751_v17 = vld [vmem:[#allocation5 + $0x358] sm:$0xf0]  ;;  %v1962_v19 = vld [vmem:[#allocation5 + $0x2c4] sm:$0xf]  ;;  %v1679_v21 = vld [vmem:[#allocation5 + $0x2c8] sm:$0xf0] }
  0x5d   :  { %965 = vmatpush.bf16.msra.mxu2 %v1578_v31  ;;  %930 = vmatpush.bf16.msrb.mxu3 %v1330_v41  ;;  %v1892_v31 = vld [vmem:[#allocation5 + $0x94] sm:$0xf]  ;;  %v1463_v41 = vld [vmem:[#allocation5 + $0x118] sm:$0xf0]  ;;  %v1978_v22 = vld [vmem:[#allocation5 + $0x344] sm:$0xf] }
  0x5e   :  { %v1402_v44 = vor.u32 %v1892_v31, %v1399_v32  ;;  %v1466_v49 = vor.u32 %v1908_v37, %v1463_v41  ;;  %v1960_v25 = vld [vmem:[#allocation5 + $0x2b4] sm:$0xf]  ;;  %v1671_v26 = vld [vmem:[#allocation5 + $0x2b8] sm:$0xf0]  ;;  %v1974_v31 = vld [vmem:[#allocation5 + $0x324] sm:$0xf] }
  0x5f   :  { %938 = vmatpush.bf16.msra.mxu0 %v1442_v42  ;;  %v1924_v42 = vld [vmem:[#allocation5 + $0x194] sm:$0xf]  ;;  %v1674_v28 = vor.u32 %v1960_v25, %v1671_v26  ;;  %v1727_v32 = vld [vmem:[#allocation5 + $0x328] sm:$0xf0]  ;;  %v1655_v37 = vld [vmem:[#allocation5 + $0x298] sm:$0xf0] }
  0x60   :  { %952 = vmatpush.bf16.msra.mxu1 %v1506_v46  ;;  %931 = vmatmul.bf16.vlgmr.msrb.gmra.mxu3 %v2246_v53  ;;  %v1418_v53 = vor.u32 %v1896_v6, %v1415_v7  ;;  %v1890_v46 = vld [vmem:[#allocation5 + $0x84] sm:$0xf]  ;;  %v1695_v7 = vld [vmem:[#allocation5 + $0x2e8] sm:$0xf0]  ;;  %v1976_v27 = vld [vmem:[#allocation5 + $0x334] sm:$0xf] }
  0x61   :  { %979 = vmatpush.bf16.msra.mxu3 %v1642_v43  ;;  %966 = vmatpush.bf16.msra.mxu2 %v1570_v47  ;;  %v1527_v43 = vld [vmem:[#allocation5 + $0x198] sm:$0xf0]  ;;  %v1391_v47 = vld [vmem:[#allocation5 + $0x88] sm:$0xf0]  ;;  %v1966_v6 = vld [vmem:[#allocation5 + $0x2e4] sm:$0xf] }
  0x62   :  { %v1530_v50 = vor.u32 %v1924_v42, %v1527_v43  ;;  %v1394_v62 = vor.u32 %v1890_v46, %v1391_v47  ;;  %v1698_v12 = vor.u32 %v1966_v6, %v1695_v7  ;;  %v1972_v38 = vld [vmem:[#allocation5 + $0x314] sm:$0xf]  ;;  %v1719_v39 = vld [vmem:[#allocation5 + $0x318] sm:$0xf0]  ;;  %v1954_v43 = vld [vmem:[#allocation5 + $0x284] sm:$0xf] }
  0x63   :  { %939 = vmatpush.bf16.msra.mxu0 %v1434_v55  ;;  %v1968_v55 = vld [vmem:[#allocation5 + $0x2f4] sm:$0xf]  ;;  %v1722_v42 = vor.u32 %v1972_v38, %v1719_v39  ;;  %v1711_v46 = vld [vmem:[#allocation5 + $0x308] sm:$0xf0]  ;;  %v1990_v52 = vld [vmem:[#allocation8 + $0x20] sm:$0xff]  ;;  %s2187_s8 = smov [#allocation11]  }
  0x64   :  { %953 = vmatpush.bf16.msra.mxu1 %v1498_v59  ;;  %v1922_v59 = vld [vmem:[#allocation5 + $0x184] sm:$0xf]  ;;  %v1991_v51 = vld [vmem:[#allocation8 + $0x28] sm:$0xff]  ;;  %v1989_v54 = vld [vmem:[#allocation8 + $0x18] sm:$0xff]  ;;  %s1278_s11 = sshll.u32 %s2187_s8, 4  ;;  %s1280_s1 = sshll.u32 %s2293_s7, 4  ;;  %s1279_s11 = int_to_ptr.vmem [resolvable:$true] %s1278_s11  ;;  %s1281_s1 = int_to_ptr.hbm [resolvable:$true] %s1280_s1 }
  0x65   :  { %980 = vmatpush.bf16.msra.mxu3 %v1634_v56  ;;  %967 = vmatpush.bf16.msra.mxu2 %v1562_v60  ;;  %v1703_v56 = vld [vmem:[#allocation5 + $0x2f8] sm:$0xf0]  ;;  %v1519_v60 = vld [vmem:[#allocation5 + $0x188] sm:$0xf0] }
  0x66   :  { %v1706_v1 = vor.u32 %v1968_v55, %v1703_v56  ;;  %v1988_v55 = vld [vmem:[#allocation8 + $0x10] sm:$0xff]  ;;  %v1999_v25 = vld [vmem:[#allocation8 + $0x68] sm:$0xff] }
  0x67   :  { %940 = vmatpush.bf16.msra.mxu0 %v1426_v4  ;;  %v1770_v4 = vor.u32 %v1984_v57, %v1767_v58  ;;  %v1987_v58 = vld [vmem:[#allocation8 + $0x8] sm:$0xff] }
  0x68   :  { %954 = vmatpush.bf16.msra.mxu1 %v1490_v9  ;;  %v1982_v9 = vld [vmem:[#allocation5 + $0x364] sm:$0xf] }
  0x69   :  { %981 = vmatpush.bf16.msra.mxu3 %v1626_v5  ;;  %968 = vmatpush.bf16.msra.mxu2 %v1554_v10  ;;  %v1522_v5 = vor.u32 %v1922_v59, %v1519_v60  ;;  %v1759_v10 = vld [vmem:[#allocation5 + $0x368] sm:$0xf0]  ;;  %v223_v59 = vld [vmem:[#allocation7] sm:$0x3] }
  0x6a   :  { %v1762_v13 = vor.u32 %v1982_v9, %v1759_v10  ;;  %v225_v60 = vperm.slane %v223_v59, 0 }
  0x6b   :  { %941 = vmatpush.bf16.msra.mxu0 %v1418_v53  ;;  %v1690_v53 = vor.u32 %v1964_v14, %v1687_v15 }
  0x6c   :  { %955 = vmatpush.bf16.msra.mxu1 %v1482_v23  ;;  %v1743_v23 = vld [vmem:[#allocation5 + $0x348] sm:$0xf0] }
  0x6d   :  { %982 = vmatpush.bf16.msra.mxu3 %v1618_v18  ;;  %969 = vmatpush.bf16.msra.mxu2 %v1546_v24  ;;  %v1754_v18 = vor.u32 %v1980_v16, %v1751_v17  ;;  %v1682_v24 = vor.u32 %v1962_v19, %v1679_v21  ;;  %v2001_v17 = vld [vmem:[#allocation8 + $0x78] sm:$0xff] }
  0x6f   :  { %942 = vmatpush.bf16.msra.mxu0 %v1410_v29  ;;  %v1958_v29 = vld [vmem:[#allocation5 + $0x2a4] sm:$0xf] }
  0x70   :  { %956 = vmatpush.bf16.msra.mxu1 %v1474_v33  ;;  %v1730_v33 = vor.u32 %v1974_v31, %v1727_v32  ;;  %v1995_v31 = vld [vmem:[#allocation8 + $0x48] sm:$0xff]  ;;  %v1994_v32 = vld [vmem:[#allocation8 + $0x40] sm:$0xff] }
  0x71   :  { %983 = vmatpush.bf16.msra.mxu3 %v1610_v30  ;;  %970 = vmatpush.bf16.msra.mxu2 %v1538_v34  ;;  %v1663_v30 = vld [vmem:[#allocation5 + $0x2a8] sm:$0xf0]  ;;  %v1956_v34 = vld [vmem:[#allocation5 + $0x294] sm:$0xf] }
  0x72   :  { %v1658_v41 = vor.u32 %v1956_v34, %v1655_v37 }
  0x73   :  { %943 = vmatpush.bf16.msra.mxu0 %v1402_v44  ;;  %v1647_v44 = vld [vmem:[#allocation5 + $0x288] sm:$0xf0] }
  0x74   :  { %957 = vmatpush.bf16.msra.mxu1 %v1466_v49  ;;  %v1650_v47 = vor.u32 %v1954_v43, %v1647_v44  ;;  %v1993_v49 = vld [vmem:[#allocation8 + $0x38] sm:$0xff] }
  0x75   :  { %984 = vmatpush.bf16.msra.mxu3 %v1602_v45  ;;  %971 = vmatpush.bf16.msra.mxu2 %v1530_v50  ;;  %v1970_v45 = vld [vmem:[#allocation5 + $0x304] sm:$0xf]  ;;  %v1992_v50 = vld [vmem:[#allocation8 + $0x30] sm:$0xff] }
  0x76   :  { %v1714_v48 = vor.u32 %v1970_v45, %v1711_v46 }
  0x77   :  { %944 = vmatpush.bf16.msra.mxu0 %v1394_v62 }
  0x78   :  { %958 = vmatpush.bf16.msra.mxu1 %v1458_v0 }
  0x79   :  { %985 = vmatpush.bf16.msra.mxu3 %v1594_v63  ;;  %972 = vmatpush.bf16.msra.mxu2 %v1522_v5 }
  0x7a   :  { %945 = vmatmul.bf16.vlgmr.msra.gmra.mxu0 %v2252_v8  ;;  %v1746_v8 = vor.u32 %v1978_v22, %v1743_v23 }
  0x7b   :  { %993 = vmatpush.bf16.msrb.mxu0 %v1706_v1  ;;  %959 = vmatmul.bf16.vlgmr.msra.gmra.mxu1 %v2248_v61  ;;  %v1735_v61 = vld [vmem:[#allocation5 + $0x338] sm:$0xf0] }
  0x7c   :  { %1007 = vmatpush.bf16.msrb.mxu1 %v1770_v4  ;;  %973 = vmatmul.bf16.vlgmr.msra.gmra.mxu2 %v2255_v20  ;;  %v1738_v20 = vor.u32 %v1976_v27, %v1735_v61 }
  0x7d   :  { %986 = vmatpush.bf16.msra.mxu3 %v1586_v11  ;;  %1159 = vmatpush.bf16.msrb.mxu2 %v1993_v49 }
  0x7f   :  { %994 = vmatpush.bf16.msrb.mxu0 %v1698_v12 }
  0x80   :  { %1008 = vmatpush.bf16.msrb.mxu1 %v1762_v13  ;;  %987 = vmatmul.bf16.vlgmr.msra.gmra.mxu3 %v2258_v35  ;;  %v1666_v35 = vor.u32 %v1958_v29, %v1663_v30  ;;  %v1996_v29 = vld [vmem:[#allocation8 + $0x50] sm:$0xff] }
  0x81   :  { %1160 = vmatpush.bf16.msrb.mxu2 %v1992_v50  ;;  %1173 = vmatpush.bf16.msrb.mxu3 %v2001_v17 }
  0x83   :  { %995 = vmatpush.bf16.msrb.mxu0 %v1690_v53 }
  0x84   :  { %1009 = vmatpush.bf16.msrb.mxu1 %v1754_v18 }
  0x85   :  { %1161 = vmatpush.bf16.msrb.mxu2 %v1991_v51 }
  0x87   :  { %996 = vmatpush.bf16.msrb.mxu0 %v1682_v24  ;;  %v2000_v24 = vld [vmem:[#allocation8 + $0x70] sm:$0xff] }
  0x88   :  { %1010 = vmatpush.bf16.msrb.mxu1 %v1746_v8  ;;  %1174 = vmatpush.bf16.msrb.mxu3 %v2000_v24 }
  0x89   :  { %1162 = vmatpush.bf16.msrb.mxu2 %v1990_v52 }
  0x8b   :  { %997 = vmatpush.bf16.msrb.mxu0 %v1674_v28  ;;  %v1998_v28 = vld [vmem:[#allocation8 + $0x60] sm:$0xff] }
  0x8c   :  { %1011 = vmatpush.bf16.msrb.mxu1 %v1738_v20  ;;  %1175 = vmatpush.bf16.msrb.mxu3 %v1999_v25  ;;  %v1997_v20 = vld [vmem:[#allocation8 + $0x58] sm:$0xff] }
  0x8d   :  { %1163 = vmatpush.bf16.msrb.mxu2 %v1989_v54 }
  0x8f   :  { %998 = vmatpush.bf16.msrb.mxu0 %v1666_v35 }
  0x90   :  { %1012 = vmatpush.bf16.msrb.mxu1 %v1730_v33  ;;  %1176 = vmatpush.bf16.msrb.mxu3 %v1998_v28  ;;  %v226_v33 = vperm.slane %v223_v59, 1 }
  0x91   :  { %1164 = vmatpush.bf16.msrb.mxu2 %v1988_v55 }
  0x93   :  { %999 = vmatpush.bf16.msrb.mxu0 %v1658_v41 }
  0x94   :  { %1013 = vmatpush.bf16.msrb.mxu1 %v1722_v42  ;;  %1177 = vmatpush.bf16.msrb.mxu3 %v1997_v20 }
  0x95   :  { %1165 = vmatpush.bf16.msrb.mxu2 %v1987_v58 }
  0x97   :  { %1000 = vmatpush.bf16.msrb.mxu0 %v1650_v47 }
  0x98   :  { %1014 = vmatpush.bf16.msrb.mxu1 %v1714_v48  ;;  %1178 = vmatpush.bf16.msrb.mxu3 %v1996_v29 }
  0x9a   :  { %1001 = vmatmul.bf16.vlgmr.msrb.gmra.mxu0 %v2260_v36  ;;  %v1986_v36 = vld [vmem:[#allocation8] sm:$0xff] }
  0x9b   :  { %1015 = vmatmul.bf16.vlgmr.msrb.gmra.mxu1 %v2262_v40  ;;  %1166 = vmatpush.bf16.msrb.mxu2 %v1986_v36 }
  0x9c   :  { %1179 = vmatpush.bf16.msrb.mxu3 %v1995_v31 }
  0xa0   :  { %1180 = vmatpush.bf16.msrb.mxu3 %v1994_v32 }
  0xb7   :  { %v834_v56 = vpop.f32.mrf.mxu0 }
  0xb8   :  { %v835_v62 = vadd.f32 %v834_v56, %v225_v60 }
  0xba   :  { %v848_v57 = vpop.f32.mrf.mxu1 }
  0xbb   :  { %v849_v1 = vadd.f32 %v848_v57, %v835_v62 }
  0xbf   :  { %v862_v40 = vpop.f32.mrf.mxu2  ;;  %v836_v63 = vpop.f32.mrf.mxu0 }
  0xc0   :  { %v837_v3 = vadd.f32 %v836_v63, %v225_v60  ;;  %v863_v5 = vadd.f32 %v862_v40, %v849_v1 }
  0xc1   :  { %v876_v2 = vpop.f32.mrf.mxu3 }
  0xc2   :  { %v850_v0 = vpop.f32.mrf.mxu1  ;;  %v877_v10 = vadd.f32 %v876_v2, %v863_v5  ;;  %v2009_v2 = vld [vmem:[#allocation10 + $0x38] sm:$0xff]  ;;  %v2006_v5 = vld [vmem:[#allocation10 + $0x20] sm:$0xff] }
  0xc3   :  { %v851_v6 = vadd.f32 %v850_v0, %v837_v3  ;;  %1258 = vmatpush.bf16.msra.mxu0 %v2009_v2  ;;  %v2008_v3 = vld [vmem:[#allocation10 + $0x30] sm:$0xff] }
  0xc7   :  { %v864_v4 = vpop.f32.mrf.mxu2  ;;  %1259 = vmatpush.bf16.msra.mxu0 %v2008_v3 }
  0xc8   :  { %v865_v11 = vadd.f32 %v864_v4, %v851_v6  ;;  %v2007_v4 = vld [vmem:[#allocation10 + $0x28] sm:$0xff]  ;;  %v2005_v6 = vld [vmem:[#allocation10 + $0x18] sm:$0xff] }
  0xc9   :  { %v878_v12 = vpop.f32.mrf.mxu3 }
  0xca   :  { %v879_v15 = vadd.f32 %v878_v12, %v865_v11 }
  0xcb   :  { %1260 = vmatpush.bf16.msra.mxu0 %v2007_v4 }
  0xcf   :  { %1261 = vmatpush.bf16.msra.mxu0 %v2006_v5 }
  0xd3   :  { %1262 = vmatpush.bf16.msra.mxu0 %v2005_v6 }
  0xd7   :  { %v890_v7 = vpop.f32.mrf.mxu0 }
  0xd8   :  { %v904_v9 = vpop.f32.mrf.mxu1  ;;  %v891_v13 = vadd.f32 %v890_v7, %v877_v10  ;;  %v2004_v7 = vld [vmem:[#allocation10 + $0x10] sm:$0xff]  ;;  %v2002_v10 = vld [vmem:[#allocation10] sm:$0xff] }
  0xd9   :  { %1263 = vmatpush.bf16.msra.mxu0 %v2004_v7 }
  0xda   :  { %v905_v53 = vadd.f32 %v904_v9, %v891_v13  ;;  %v2003_v9 = vld [vmem:[#allocation10 + $0x8] sm:$0xff]  ;;  %v2022_v13 = vld [vmem:[%s2290_s4] ss:$0 sm:$0xff] }
  0xdd   :  { %1264 = vmatpush.bf16.msra.mxu0 %v2003_v9 }
  0xdf   :  { %v918_v14 = vpop.f32.mrf.mxu2  ;;  %v892_v16 = vpop.f32.mrf.mxu0 }
  0xe0   :  { %v893_v18 = vadd.f32 %v892_v16, %v879_v15  ;;  %v906_v19 = vpop.f32.mrf.mxu1  ;;  %v919_v21 = vadd.f32 %v918_v14, %v905_v53 }
  0xe1   :  { %1265 = vmatpush.bf16.msra.mxu0 %v2002_v10 }
  0xe2   :  { %v907_v22 = vadd.f32 %v906_v19, %v893_v18  ;;  %v1021_v26 = vmax.f32 %v919_v21, 0.0 }
  0xe3   :  { %v932_v30 = vpop.f32.mrf.mxu3 }
  0xe4   :  { %v933_v38 = vadd.f32 %v932_v30, %v226_v33 }
  0xe7   :  { %v920_v23 = vpop.f32.mrf.mxu2 }
  0xe8   :  { %v921_v8 = vadd.f32 %v920_v23, %v907_v22  ;;  %v2023_v23 = vld [vmem:[%s2292_s6] ss:$0 sm:$0xff] }
  0xea   :  { %v1023_v27 = vmax.f32 %v921_v8, 0.0 }
  0xeb   :  { %v934_v37 = vpop.f32.mrf.mxu3 }
  0xec   :  { %v1025_v61 = vpack.c.bf16 %v1023_v27, %v1021_v26  ;;  %v935_v41 = vadd.f32 %v934_v37, %v226_v33 }
  0xee   :  { %1167 = vmatmul.bf16.vlgmr.msrb.gmra.mxu2 %v1025_v61 }
  0xf7   :  { %v946_v35 = vpop.f32.mrf.mxu0 }
  0xf8   :  { %v960_v34 = vpop.f32.mrf.mxu1  ;;  %v947_v42 = vadd.f32 %v946_v35, %v933_v38 }
  0xfa   :  { %v961_v46 = vadd.f32 %v960_v34, %v947_v42 }
  0xff   :  { %v974_v39 = vpop.f32.mrf.mxu2  ;;  %v948_v43 = vpop.f32.mrf.mxu0 }
 0x100   :  { %v962_v44 = vpop.f32.mrf.mxu1  ;;  %v949_v47 = vadd.f32 %v948_v43, %v935_v41  ;;  %v975_v48 = vadd.f32 %v974_v39, %v961_v46 }
 0x102   :  { %v963_v49 = vadd.f32 %v962_v44, %v949_v47 }
 0x103   :  { %v988_v45 = vpop.f32.mrf.mxu3 }
 0x104   :  { %v989_v54 = vadd.f32 %v988_v45, %v975_v48 }
 0x107   :  { %v976_v50 = vpop.f32.mrf.mxu2 }
 0x108   :  { %v977_v55 = vadd.f32 %v976_v50, %v963_v49 }
 0x10b   :  { %v990_v56 = vpop.f32.mrf.mxu3 }
 0x10c   :  { %v991_v58 = vadd.f32 %v990_v56, %v977_v55 }
 0x117   :  { %v1002_v51 = vpop.f32.mrf.mxu0 }
 0x118   :  { %v1016_v52 = vpop.f32.mrf.mxu1  ;;  %v1003_v57 = vadd.f32 %v1002_v51, %v989_v54 }
 0x11a   :  { %v1017_v36 = vadd.f32 %v1016_v52, %v1003_v57 }
 0x11c   :  { %v1022_v63 = vmax.f32 %v1017_v36, 0.0 }
 0x11f   :  { %v1004_v59 = vpop.f32.mrf.mxu0 }
 0x120   :  { %v1005_v60 = vadd.f32 %v1004_v59, %v991_v58  ;;  %v1018_v40 = vpop.f32.mrf.mxu1 }
 0x122   :  { %v1019_v62 = vadd.f32 %v1018_v40, %v1005_v60 }
 0x124   :  { %v1024_v0 = vmax.f32 %v1019_v62, 0.0 }
 0x126   :  { %v1026_v1 = vpack.c.bf16 %v1024_v0, %v1022_v63 }
 0x128   :  { %1181 = vmatmul.bf16.vlgmr.msrb.gmra.mxu3 %v1026_v1 }
 0x171   :  { %v1168_v11 = vpop.f32.mrf.mxu2 }
 0x172   :  { %v1169_v15 = vadd.f32 %v2022_v13, %v1168_v11 }
 0x179   :  { %v1170_v14 = vpop.f32.mrf.mxu2 }
 0x17a   :  { %v1171_v16 = vadd.f32 %v2022_v13, %v1170_v14 }
 0x1ab   :  { %v1182_v12 = vpop.f32.mrf.mxu3 }
 0x1ac   :  { %v1183_v17 = vadd.f32 %v1182_v12, %v1169_v15 }
 0x1ae   :  { %v1187_v19 = vmax.f32 %v1183_v17, 0.0 }
 0x1b3   :  { %v1184_v53 = vpop.f32.mrf.mxu3 }
 0x1b4   :  { %v1185_v18 = vadd.f32 %v1184_v53, %v1171_v16 }
 0x1b6   :  { %v1188_v21 = vmax.f32 %v1185_v18, 0.0 }
 0x1b8   :  { %v1189_v22 = vpack.c.bf16 %v1188_v21, %v1187_v19 }
 0x1ba   :  { %1266 = vmatmul.bf16.vlgmr.msra.gmra.mxu0 %v1189_v22 }
 0x237   :  { %v1267_v24 = vpop.f32.mrf.mxu0 }
 0x238   :  { %v1268_v8 = vadd.f32 %v2023_v23, %v1267_v24 }
 0x23a   :  { %1272 = vst [vmem:[#allocation11] sm:$0xff] %v1268_v8 }
 0x23f   :  { %v1269_v25 = vpop.f32.mrf.mxu0 }
 0x240   :  { %v1270_v26 = vadd.f32 %v2023_v23, %v1269_v25 }
 0x242   :  { %1273 = vst [vmem:[#allocation11 + $0x8] sm:$0xff] %v1270_v26 }
 0x243   :  { %1286 = dma.vmem_to_hbm [thread:$0]  %s1279_s11, 256, %s1281_s1, [#allocation4], %s2177_s9, %s2177_s9, %s2178_s10  }
 0x244   :  { %2174 = dma.done.wait [#allocation4], 256  }
 0x245   :  { %2175 = vsyncadd [#allocation4], 4294967040 }
 0x246   :  { %1291 = vsyncpa [#allocation3], 1 }
 0x247   :  { %1292 = vsyncpa [#allocation6], 1 }
 0x248   :  { %1293 = vsyncpa [#allocation9], 1 }
 0x249   :  { %1294 = vsyncpa [#allocation4], 1 }

</bundles_post_ra>
